<compile_context>
chip_gen: v7x
topology: tpu7x:2x2x1
jax: 0.10.0
libtpu: 0.0.40
codegen_flags: <defaults>
</compile_context>

<pallas_src>
import functools
import math

import jax
import jax.numpy as jnp
import numpy as np
from jax.experimental import pallas as pl
from jax.experimental.pallas import tpu as pltpu


def _sdpa_kernel(q_ref, k_ref, v_ref, mask_ref, o_ref, acc_ref, *, scale):
    # Block views (batch dim squeezed away by the BlockSpec `None`):
    #   q_ref   : [H, Tq, D]   native dtype
    #   k_ref   : [H, Tk, D]
    #   v_ref   : [H, Tk, D]
    #   mask_ref: [Tq, Tk]     int8, nonzero == masked (shared across batch/heads)
    #   o_ref   : [H, Tq, D]
    #   acc_ref : [H, Tq, D]   f32 scratch (ctx accumulator over the k axis)
    ki = pl.program_id(2)

    @pl.when(ki == 0)
    def _init():
        acc_ref[...] = jnp.zeros_like(acc_ref)

    # Fold 1/sqrt(head_dim) into Q (fewer elements than scaling the scores).
    q = q_ref[...] * scale                     # stays in native dtype (weak scalar)
    k = k_ref[...]
    v = v_ref[...]

    # attention_score = Q @ K^T  (MXU fed in native dtype, f32 accumulation)
    scores = jnp.einsum("hqd,hkd->hqk", q, k,
                        preferred_element_type=jnp.float32)   # [H, Tq, Tk] f32

    # masked_fill_(mask_bool, -inf); mask is shared across heads.
    masked = mask_ref[...] != 0                                # [Tq, Tk] bool
    scores = jnp.where(masked[None, :, :], -jnp.inf, scores)

    # torch.softmax(..., dim=1)  ->  softmax over the HEAD axis.
    # Per-(q, k) normalization across heads, fully local to this tile.
    m = jnp.max(scores, axis=0, keepdims=True)
    e = jnp.exp(scores - m)
    s = jnp.sum(e, axis=0, keepdims=True)
    w = e * pl.reciprocal(s, approx=True)

    # dropout == identity (eval mode)

    # Accumulate ctx = attention_weight @ V over the k tiles.
    acc_ref[...] += jnp.einsum("hqk,hkd->hqd", w.astype(v.dtype), v,
                               preferred_element_type=jnp.float32)

    @pl.when(ki == pl.num_programs(2) - 1)
    def _finalize():
        o_ref[...] = acc_ref[...].astype(o_ref.dtype)


def scaled_dot_product_attention(Q, K, V, head_dim, mask_bool, *,
                                 block_q=None, block_k=None):
    """Q, K, V: [B, H, S, D]; mask_bool broadcastable to [S, S] (shared over B, H).
    Returns [B, S, H, D] (PyTorch context_vector after transpose(1, 2))."""
    B, H, S, D = Q.shape
    scale = 1.0 / math.sqrt(float(head_dim))

    # Shared mask block: [S, S] int8 — no [B, H, S, S] broadcast, no int32 widening.
    mask = jnp.asarray(mask_bool)
    while mask.ndim > 2:
        if mask.shape[0] != 1:
            raise NotImplementedError(
                "kernel expects a mask shared across batch and heads")
        mask = mask[0]
    mask2d = jnp.broadcast_to(mask, (S, S)).astype(jnp.int8)

    # Tile sizes (bounded live data; re-derived so v7x's 64 MiB VMEM is fine).
    bq = block_q if block_q is not None else min(S, 256)
    bk = block_k if block_k is not None else min(S, 256)
    if S % bq != 0 or (bq != S and bq % 8 != 0):
        bq = S
    if S % bk != 0 or (bk != S and bk % 128 != 0):   # mask lane dim constraint
        bk = S

    grid = (B, S // bq, S // bk)
    kernel = functools.partial(_sdpa_kernel, scale=scale)

    out_bhsd = pl.pallas_call(
        kernel,
        out_shape=jax.ShapeDtypeStruct((B, H, S, D), Q.dtype),
        grid_spec=pltpu.PrefetchScalarGridSpec(
            num_scalar_prefetch=0,
            grid=grid,
            in_specs=[
                pl.BlockSpec((None, H, bq, D), lambda b, qi, ki: (b, 0, qi, 0)),
                pl.BlockSpec((None, H, bk, D), lambda b, qi, ki: (b, 0, ki, 0)),
                pl.BlockSpec((None, H, bk, D), lambda b, qi, ki: (b, 0, ki, 0)),
                pl.BlockSpec((bq, bk), lambda b, qi, ki: (qi, ki)),
            ],
            out_specs=pl.BlockSpec((None, H, bq, D), lambda b, qi, ki: (b, 0, qi, 0)),
            scratch_shapes=[pltpu.VMEM((H, bq, D), jnp.float32)],
        ),
        compiler_params=pltpu.CompilerParams(
            dimension_semantics=("parallel", "parallel", "arbitrary"),
            vmem_limit_bytes=48 * 1024 * 1024,
        ),
    )(Q, K, V, mask2d)

    # context_vector = (attention_weight @ V).transpose(1, 2)  -> [B, S, H, D]
    return jnp.transpose(out_bhsd, (0, 2, 1, 3))


def _reference(Q, K, V, head_dim, mask_bool):
    scores = jnp.einsum("bhqd,bhkd->bhqk",
                        Q.astype(jnp.float32), K.astype(jnp.float32))
    scores = scores / jnp.sqrt(jnp.float32(head_dim))
    scores = jnp.where(jnp.broadcast_to(jnp.asarray(mask_bool), scores.shape),
                       -jnp.inf, scores)
    m = jnp.max(scores, axis=1, keepdims=True)            # softmax over HEAD axis
    e = jnp.exp(scores - m)
    w = e / jnp.sum(e, axis=1, keepdims=True)
    ctx = jnp.einsum("bhqk,bhkd->bhqd", w, V.astype(jnp.float32))
    return jnp.transpose(ctx, (0, 2, 1, 3)).astype(Q.dtype)


if __name__ == "__main__":
    def run_case(B, H, S, D, mask_bool, block_q=None, block_k=None):
        key = jax.random.PRNGKey(0)
        kq, kk, kv = jax.random.split(key, 3)
        Q = jax.random.normal(kq, (B, H, S, D), dtype=jnp.float32)
        K = jax.random.normal(kk, (B, H, S, D), dtype=jnp.float32)
        V = jax.random.normal(kv, (B, H, S, D), dtype=jnp.float32)
        out = jax.block_until_ready(
            scaled_dot_product_attention(Q, K, V, D, mask_bool,
                                         block_q=block_q, block_k=block_k))
        ref = jax.block_until_ready(_reference(Q, K, V, D, mask_bool))
        # NaN positions (fully masked head-softmax columns, inherent to the
        # reference's dim=1 softmax with a head-shared mask) compare equal.
        np.testing.assert_allclose(np.asarray(out), np.asarray(ref),
                                   rtol=5e-3, atol=5e-3)

    # Case 1: module-sized small shapes with a causal mask (matches the spec test).
    S1 = 8
    causal = jnp.triu(jnp.ones((S1, S1), dtype=jnp.bool_), k=1)[None, None]
    run_case(2, 4, S1, 32, causal)

    # Case 2: multi-tile q/k grid (S=256, 128-wide blocks), no masking — exercises
    # the pl.when init / k-accumulation / finalize path with fully finite values.
    S2 = 256
    nomask = jnp.zeros((1, 1, S2, S2), dtype=jnp.bool_)
    run_case(2, 4, S2, 32, nomask, block_q=128, block_k=128)

    print("KERNEL_OK")
</pallas_src>

<mosaic_0001>
module attributes {stable_mosaic.version = 11 : i64} {
  func.func @_sdpa_kernel(%arg0: i32, %arg1: i32, %arg2: i32, %arg3: memref<1x4x8x32xf32, #tpu.memory_space<vmem>>, %arg4: memref<1x4x8x32xf32, #tpu.memory_space<vmem>>, %arg5: memref<1x4x8x32xf32, #tpu.memory_space<vmem>>, %arg6: memref<8x8xi8, #tpu.memory_space<vmem>>, %arg7: memref<1x4x8x32xf32, #tpu.memory_space<vmem>>, %arg8: memref<4x8x32xf32, #tpu.memory_space<vmem>>) attributes {dimension_semantics = [#tpu.dimension_semantics<parallel>, #tpu.dimension_semantics<parallel>, #tpu.dimension_semantics<arbitrary>], iteration_bounds = array<i64: 2, 1, 1>, scalar_prefetch = 0 : i64, scratch_operands = 1 : i64, tpu.core_type = #tpu.core_type<tc>, window_params = [{transform_indices = @transform_0, window_bounds = array<i64: 1, 4, 8, 32>}, {transform_indices = @transform_1, window_bounds = array<i64: 1, 4, 8, 32>}, {transform_indices = @transform_2, window_bounds = array<i64: 1, 4, 8, 32>}, {transform_indices = @transform_3, window_bounds = array<i64: 8, 8>}, {transform_indices = @transform_4, window_bounds = array<i64: 1, 4, 8, 32>}]} {
    %c0_i32 = arith.constant 0 : i32
    %0 = arith.cmpi eq, %arg2, %c0_i32 : i32
    %1 = arith.extui %0 : i1 to i32
    %c0_i32_0 = arith.constant 0 : i32
    %2 = arith.cmpi ne, %1, %c0_i32_0 : i32
    scf.if %2 {
      %cst_27 = arith.constant 0.000000e+00 : f32
      %37 = vector.broadcast %cst_27 : f32 to vector<4x8x32xf32>
      %c0_28 = arith.constant 0 : index
      %c0_29 = arith.constant 0 : index
      %c0_30 = arith.constant 0 : index
      %38 = vector.load %arg8[%c0_28, %c0_29, %c0_30] : memref<4x8x32xf32, #tpu.memory_space<vmem>>, vector<4x8x32xf32>
      tpu.vector_store %arg8[%c0_28, %c0_29, %c0_30], %37 {strides = array<i32>} : memref<4x8x32xf32, #tpu.memory_space<vmem>>, vector<4x8x32xf32>,
    } else {
    }
    %c0 = arith.constant 0 : index
    %c0_1 = arith.constant 0 : index
    %c0_2 = arith.constant 0 : index
    %c0_3 = arith.constant 0 : index
    %3 = vector.load %arg3[%c0, %c0_1, %c0_2, %c0_3] : memref<1x4x8x32xf32, #tpu.memory_space<vmem>>, vector<1x4x8x32xf32>
    %4 = vector.shape_cast %3 : vector<1x4x8x32xf32> to vector<4x8x32xf32>
    %cst = arith.constant 0.176776692 : f32
    %5 = vector.broadcast %cst : f32 to vector<4x8x32xf32>
    %6 = arith.mulf %4, %5 : vector<4x8x32xf32>
    %c0_4 = arith.constant 0 : index
    %c0_5 = arith.constant 0 : index
    %c0_6 = arith.constant 0 : index
    %c0_7 = arith.constant 0 : index
    %7 = vector.load %arg4[%c0_4, %c0_5, %c0_6, %c0_7] : memref<1x4x8x32xf32, #tpu.memory_space<vmem>>, vector<1x4x8x32xf32>
    %8 = vector.shape_cast %7 : vector<1x4x8x32xf32> to vector<4x8x32xf32>
    %c0_8 = arith.constant 0 : index
    %c0_9 = arith.constant 0 : index
    %c0_10 = arith.constant 0 : index
    %c0_11 = arith.constant 0 : index
    %9 = vector.load %arg5[%c0_8, %c0_9, %c0_10, %c0_11] : memref<1x4x8x32xf32, #tpu.memory_space<vmem>>, vector<1x4x8x32xf32>
    %10 = vector.shape_cast %9 : vector<1x4x8x32xf32> to vector<4x8x32xf32>
    "tpu.trace_start"() <{level = 10 : i32, message = "hqd,hkd->hqk"}> : () -> ()
    %cst_12 = arith.constant dense<0.000000e+00> : vector<4x8x8xf32>
    %11 = tpu.matmul %6, %8, %cst_12 {dimension_numbers = #tpu.dot_dimension_numbers<[2], [2], [1], [1], [0, 0, 0, 1, 1, 1], [0], [0]>} : vector<4x8x32xf32>, vector<4x8x32xf32>, vector<4x8x8xf32> -> vector<4x8x8xf32>
    "tpu.trace_stop"() : () -> ()
    %c0_13 = arith.constant 0 : index
    %c0_14 = arith.constant 0 : index
    %12 = vector.load %arg6[%c0_13, %c0_14] : memref<8x8xi8, #tpu.memory_space<vmem>>, vector<8x8xi8>
    %c0_i8 = arith.constant 0 : i8
    %13 = vector.broadcast %c0_i8 : i8 to vector<8x8xi8>
    %14 = arith.cmpi ne, %12, %13 : vector<8x8xi8>
    %15 = vector.shape_cast %14 : vector<8x8xi1> to vector<1x8x8xi1>
    %cst_15 = arith.constant 0xFF800000 : f32
    %16 = vector.shape_cast %15 : vector<1x8x8xi1> to vector<1x8x8xi1>
    %17 = vector.broadcast %16 : vector<1x8x8xi1> to vector<4x8x8xi1>
    %18 = vector.broadcast %cst_15 : f32 to vector<4x8x8xf32>
    %19 = arith.select %17, %18, %11 : vector<4x8x8xi1>, vector<4x8x8xf32>
    %cst_16 = arith.constant dense<0xFF800000> : vector<8x8xf32>
    %20 = vector.multi_reduction <maximumf>, %19, %cst_16 [0] : vector<4x8x8xf32> to vector<8x8xf32>
    %21 = vector.shape_cast %20 : vector<8x8xf32> to vector<1x8x8xf32>
    %22 = vector.broadcast %21 : vector<1x8x8xf32> to vector<4x8x8xf32>
    %23 = arith.subf %19, %22 : vector<4x8x8xf32>
    %24 = math.exp %23 : vector<4x8x8xf32>
    %cst_17 = arith.constant dense<0.000000e+00> : vector<8x8xf32>
    %25 = vector.multi_reduction <add>, %24, %cst_17 [0] : vector<4x8x8xf32> to vector<8x8xf32>
    %26 = vector.shape_cast %25 : vector<8x8xf32> to vector<1x8x8xf32>
    %27 = tpu.reciprocal %26 {approx = true} : vector<1x8x8xf32> -> vector<1x8x8xf32>
    %28 = vector.broadcast %27 : vector<1x8x8xf32> to vector<4x8x8xf32>
    %29 = arith.mulf %24, %28 : vector<4x8x8xf32>
    %c0_18 = arith.constant 0 : index
    %c0_19 = arith.constant 0 : index
    %c0_20 = arith.constant 0 : index
    %30 = vector.load %arg8[%c0_18, %c0_19, %c0_20] : memref<4x8x32xf32, #tpu.memory_space<vmem>>, vector<4x8x32xf32>
    "tpu.trace_start"() <{level = 10 : i32, message = "hqk,hkd->hqd"}> : () -> ()
    %cst_21 = arith.constant dense<0.000000e+00> : vector<4x8x32xf32>
    %31 = tpu.matmul %29, %10, %cst_21 {dimension_numbers = #tpu.dot_dimension_numbers<[2], [1], [1], [2], [0, 0, 0, 1, 1, 2], [0], [0]>} : vector<4x8x8xf32>, vector<4x8x32xf32>, vector<4x8x32xf32> -> vector<4x8x32xf32>
    "tpu.trace_stop"() : () -> ()
    %32 = arith.addf %30, %31 : vector<4x8x32xf32>
    %c0_22 = arith.constant 0 : index
    %c0_23 = arith.constant 0 : index
    %c0_24 = arith.constant 0 : index
    %33 = vector.load %arg8[%c0_22, %c0_23, %c0_24] : memref<4x8x32xf32, #tpu.memory_space<vmem>>, vector<4x8x32xf32>
    tpu.vector_store %arg8[%c0_22, %c0_23, %c0_24], %32 {strides = array<i32>} : memref<4x8x32xf32, #tpu.memory_space<vmem>>, vector<4x8x32xf32>,
    %c0_i32_25 = arith.constant 0 : i32
    %34 = arith.cmpi eq, %arg2, %c0_i32_25 : i32
    %35 = arith.extui %34 : i1 to i32
    %c0_i32_26 = arith.constant 0 : i32
    %36 = arith.cmpi ne, %35, %c0_i32_26 : i32
    scf.if %36 {
      %c0_27 = arith.constant 0 : index
      %c0_28 = arith.constant 0 : index
      %c0_29 = arith.constant 0 : index
      %37 = vector.load %arg8[%c0_27, %c0_28, %c0_29] : memref<4x8x32xf32, #tpu.memory_space<vmem>>, vector<4x8x32xf32>
      %c0_30 = arith.constant 0 : index
      %c0_31 = arith.constant 0 : index
      %c0_32 = arith.constant 0 : index
      %c0_33 = arith.constant 0 : index
      %38 = vector.load %arg7[%c0_30, %c0_31, %c0_32, %c0_33] : memref<1x4x8x32xf32, #tpu.memory_space<vmem>>, vector<1x4x8x32xf32>
      %39 = vector.shape_cast %38 : vector<1x4x8x32xf32> to vector<4x8x32xf32>
      %40 = vector.shape_cast %37 : vector<4x8x32xf32> to vector<1x4x8x32xf32>
      tpu.vector_store %arg7[%c0_30, %c0_31, %c0_32, %c0_33], %40 {strides = array<i32>} : memref<1x4x8x32xf32, #tpu.memory_space<vmem>>, vector<1x4x8x32xf32>,
    } else {
    }
    return
  }
  func.func @transform_0(%arg0: i32, %arg1: i32, %arg2: i32) -> (i32, i32, i32, i32) {
    %c0_i32 = arith.constant 0 : i32
    %c0_i32_0 = arith.constant 0 : i32
    %c0_i32_1 = arith.constant 0 : i32
    return %arg0, %c0_i32, %arg1, %c0_i32_0 : i32, i32, i32, i32
  }
  func.func @transform_1(%arg0: i32, %arg1: i32, %arg2: i32) -> (i32, i32, i32, i32) {
    %c0_i32 = arith.constant 0 : i32
    %c0_i32_0 = arith.constant 0 : i32
    %c0_i32_1 = arith.constant 0 : i32
    return %arg0, %c0_i32, %arg2, %c0_i32_0 : i32, i32, i32, i32
  }
  func.func @transform_2(%arg0: i32, %arg1: i32, %arg2: i32) -> (i32, i32, i32, i32) {
    %c0_i32 = arith.constant 0 : i32
    %c0_i32_0 = arith.constant 0 : i32
    %c0_i32_1 = arith.constant 0 : i32
    return %arg0, %c0_i32, %arg2, %c0_i32_0 : i32, i32, i32, i32
  }
  func.func @transform_3(%arg0: i32, %arg1: i32, %arg2: i32) -> (i32, i32) {
    %c0_i32 = arith.constant 0 : i32
    return %arg1, %arg2 : i32, i32
  }
  func.func @transform_4(%arg0: i32, %arg1: i32, %arg2: i32) -> (i32, i32, i32, i32) {
    %c0_i32 = arith.constant 0 : i32
    %c0_i32_0 = arith.constant 0 : i32
    %c0_i32_1 = arith.constant 0 : i32
    return %arg0, %c0_i32, %arg1, %c0_i32_0 : i32, i32, i32, i32
  }
}

</mosaic_0001>

<bundles_post_ra>
// kernel: tpu_custom_call.1
= control target key start
LH: loop header
LB: loop body
LE: loop exit
PB: predicated region body
PF: predicated region fallthrough
CT: control target
= control target key end

     0   :  { %s1967_s0 = inlined_call_operand.hbm [shape: f32[2,4,8,32], index: 0, kind: input, shape index: {}]   ;;  %s1968_s1 = inlined_call_operand.hbm [shape: f32[2,4,8,32], index: 1, kind: input, shape index: {}]   ;;  %s1969_s2 = inlined_call_operand.hbm [shape: f32[2,4,8,32], index: 2, kind: input, shape index: {}]   ;;  %s1970_s3 = inlined_call_operand.vmem [shape: s8[8,8], index: 3, kind: input, shape index: {}]   ;;  %s1971_s4 = inlined_call_operand.hbm [shape: f32[2,4,8,32], index: 4, kind: output, shape index: {}]  }
   0x1   :  { %1983 = sst [smem:[#allocation17_spill]] %s1968_s1 }
   0x2   :  { %9 = vsyncpa [#allocation4], 0 }
   0x3   :  { %11 = vsyncpa [#allocation4 + $0x1], 0 }
   0x4   :  { %12 = vsyncpa [#allocation7], 0 }
   0x5   :  { %14 = vsyncpa [#allocation7 + $0x1], 0 }
   0x6   :  { %15 = vsyncpa [#allocation5], 0 }
   0x7   :  { %17 = vsyncpa [#allocation5 + $0x1], 0  ;;  %s1608_s15 = smov 0   ;;  %s1610_s16 = smov 0  }
   0x8   :  { %s1612_s17 = smov 0   ;;  %s1614_s18 = smov 0  }
   0x9   :  { %s1616_s19 = smov 0   ;;  %s1618_s20 = smov 0  }
   0xa LB: > { %1984 = sst [smem:[#allocation13_spill]] %s1566_s19  ;;  %s1639_s21 = sadd.s32 4294967295, %s1570_s20   ;;  %s1570_s20 = sphi %s1618_s20, %s23_s20   ;;  %s1566_s19 = sphi %s1616_s19, %s2009_s19   ;;  %s1562_s18 = sphi %s1614_s18, %s2008_s18   ;;  %s1558_s17 = sphi %s1612_s17, %s2012_s17   ;;  %s1554_s16 = sphi %s1610_s16, %s2011_s16   ;;  %s1550_s15 = sphi %s1608_s15, %s2010_s15  }
   0xb   : > { %1985 = sst [smem:[#allocation14_spill]] %s1570_s20  ;;  %s1210_s22 = sadd.s32 4294967294, %s1570_s20  }
   0xc   : > { %s42_s23 = sadd.s32 1, %s1566_s19  ;;  %s51_s24 = sadd.s32 1, %s1558_s17 }
   0xd   : > { %p44_p0 = scmp.ge.s32.totalorder %s42_s23, 2  ;;  %p58_p1 = scmp.ne.s32.totalorder %s1558_s17, %s1554_s16 }
   0xe   : > { %p59_p2 = scmp.eq.s32.totalorder %s1570_s20, 0  ;;  %p64_p3 = scmp.ne.s32.totalorder %s1554_s16, %s1550_s15 }
   0xf   : > { %s2014_s23 = smov (%p44_p0, %s42_s23), 0  ;;  %p65_p5 = scmp.eq.s32.totalorder %s1639_s21, 0 }
  0x10   : > { %1986 = sst [smem:[#allocation15_spill]] %s2014_s23  ;;  %p1651_p4 = por %p59_p2, %p58_p1 }
  0x11   : > { %s46_s26 = ssub.s32 %s1566_s19, %s2014_s23  ;;  %p174_p6 = scmp.eq.s32.totalorder %s1639_s21, 1 }
  0x12   : > { %p49_p7 = scmp.eq.s32.totalorder %s46_s26, 0  ;;  %p1659_p8 = por %p65_p5, %p64_p3 }
  0x13   : > { %p1663_p9 = por %p174_p6, %p58_p1  ;;  %p180_p10 = scmp.eq.s32.totalorder %s1210_s22, 1 }
  0x14   : > { %s1988_s27 = scalar_select %p1659_p8, 1, 0 }
  0x15   : > { %s1989_s28 = scalar_select %p1663_p9, 1, 0 }
  0x16   : > { %s1668_s29 = scalar_select %p49_p7, %s1558_s17, %s51_s24  }
  0x17   : > { %p1670_p11 = por %p180_p10, %p64_p3  ;;  %p1327_p13 = scmp.lt.s32.totalorder %s1570_s20, 2 }
  0x18   : > { %1990 = sst [smem:[#allocation16_spill]] %s1668_s29  ;;  %s1972_s5 = sand.u32 1, %s1558_s17  }
  0x19   : > { %s1991_s30 = scalar_select %p1670_p11, 1, 0 }
  0x1a   : > { %s1679_s6 = sshll.u32 %s1972_s5, 5  ;;  %s1682_s7 = sshll.u32 %s1566_s19, 9 }
  0x1b   : > { %p1686_p0 = pnand %p1327_p13, %p1651_p4  ;;  %s232_s9 = sand.u32 1, %s1570_s20  }
  0x1c   : > { %s1993_s1 = sld [smem:[#allocation17_spill]]  ;;  %s236_s13 = scalar_lea.vmem [#allocation6], %s1679_s6 }
  0x1d   : > { %s244_s14 = sshll.u32 %s236_s13, 4  ;;  %s1702_s22 = scalar_lea.sflag [#allocation7], %s232_s9  ;;  %s1699_s14 = int_to_ptr.vmem [resolvable:$true] %s244_s14 }
  0x1e   : > { %p1708_p4 = pneg %p1686_p0 }
  0x22   : > { %s1695_s12 = scalar_lea.hbm %s1993_s1, %s1682_s7  ;;  %s1399_s11 = scalar_lea.hbm %s1993_s1, 1024 }
  0x23   : > { %s1394_s24 = scalar_lea.hbm %s1695_s12, 512  ;;  %p1400_p7 = scmp.lt.u32.totalorder %s1695_s12, %s1993_s1 }
  0x24   : > { %p1395_p3 = scmp.ne.s32.totalorder %s1695_s12, %s1394_s24  ;;  %p1401_p10 = scmp.lt.u32.totalorder %s1399_s11, %s1394_s24 }
  0x25   : > { %p1403_p12 = scmp.lt.u32.totalorder %s1394_s24, %s1695_s12 }
  0x26   : > { %p1397_p5 = pnand %p1708_p4, %p1395_p3  ;;  %p1402_p13 = por %p1401_p10, %p1400_p7 }
  0x28   : > { %p1398_p6 = pneg %p1397_p5  ;;  %p1404_p1 = por %p1403_p12, %p1402_p13 }
  0x2a   : > { %p1405_p2 = pnand %p1404_p1, %p1398_p6 }
  0x2c   : > { %1408 = shalt.err (!%p1405_p2)
}
  0x2d   : > { %s1409_s9 = scalar_lea.vmem %s1699_s14, 512  ;;  %s1572_s26 = smov [#allocation6]  }
  0x2e   : > { %p1410_p3 = scmp.ne.s32.totalorder %s1699_s14, %s1409_s9  ;;  %s1414_s10 = sshll.u32 %s1572_s26, 4  ;;  %s1415_s10 = int_to_ptr.vmem [resolvable:$false] %s1414_s10 }
  0x2f   : > { %s1416_s5 = scalar_lea.vmem %s1415_s10, 1024  ;;  %p1417_p9 = scmp.lt.s32.totalorder %s1699_s14, %s1415_s10 }
  0x30   : > { %p1412_p5 = pnand %p1410_p3, %p1708_p4  ;;  %p1418_p8 = scmp.lt.s32.totalorder %s1416_s5, %s1409_s9 }
  0x32   : > { %p1413_p11 = pneg %p1412_p5  ;;  %p1419_p7 = por %p1418_p8, %p1417_p9 }
  0x34   : > { %p1420_p10 = pnand %p1419_p7, %p1413_p11 }
  0x36   : > { %1423 = shalt.err (!%p1420_p10)
}
  0x37   : > { %s1975_s24 = smov 128   ;;  %s1977_s11 = smov 8  }
  0x38   : > { %1319 = dma.hbm_to_vmem [thread:$0]  (!%p1686_p0), %s1695_s12, 512, %s1699_s14, %s1702_s22, %s1975_s24, %s1975_s24, %s1977_s11  }
  0x39   : > { %p1995_p8 = scmp.lt.s32.totalorder %s1570_s20, 3  ;;  %p1996_p9 = scmp.ge.s32.totalorder %s1570_s20, 1 }
  0x3a   : > { %s1747_s10 = scalar_lea.hbm %s1967_s0, %s1682_s7  ;;  %s214_s5 = scalar_lea.vmem [#allocation3], %s1679_s6 }
  0x3b   : > { %p1739_p11 = pnand %p1996_p9, %p1995_p8  ;;  %s222_s1 = sshll.u32 %s214_s5, 4  ;;  %s1750_s1 = int_to_ptr.vmem [resolvable:$true] %s222_s1 }
  0x3c   : > { %s1756_s24 = scalar_lea.hbm %s1969_s2, %s1682_s7  ;;  %s1998_s11 = sand.u32 1, %s1558_s17  }
  0x3d   : > { %s1997_s13 = scalar_select %p1739_p11, 1, 0 }
  0x3e   : > { %s1760_s23 = scalar_lea.sflag [#allocation4], %s1998_s11  ;;  %s1424_s19 = scalar_lea.hbm %s1747_s10, 512 }
  0x3f   : > { %p1425_p12 = scmp.ne.s32.totalorder %s1747_s10, %s1424_s19  ;;  %s1429_s29 = scalar_lea.hbm %s1967_s0, 1024 }
  0x40   : > { %p1430_p6 = scmp.lt.u32.totalorder %s1747_s10, %s1967_s0  ;;  %p1431_p13 = scmp.lt.u32.totalorder %s1429_s29, %s1424_s19 }
  0x41   : > { %p1427_p1 = pnand %p1425_p12, %p1708_p4  ;;  %p1433_p5 = scmp.lt.u32.totalorder %s1424_s19, %s1747_s10 }
  0x42   : > { %p1432_p3 = por %p1431_p13, %p1430_p6 }
  0x43   : > { %p1428_p2 = pneg %p1427_p1 }
  0x44   : > { %p1434_p7 = por %p1433_p5, %p1432_p3 }
  0x46   : > { %p1435_p10 = pnand %p1434_p7, %p1428_p2 }
  0x48   : > { %1438 = shalt.err (!%p1435_p10)
}
  0x49   : > { %s1439_s7 = scalar_lea.vmem %s1750_s1, 512  ;;  %s1575_s11 = smov [#allocation3]  }
  0x4a   : > { %p1440_p8 = scmp.ne.s32.totalorder %s1750_s1, %s1439_s7  ;;  %s1444_s12 = sshll.u32 %s1575_s11, 4  ;;  %s1445_s12 = int_to_ptr.vmem [resolvable:$false] %s1444_s12 }
  0x4b   : > { %s1446_s20 = scalar_lea.vmem %s1445_s12, 1024  ;;  %p1447_p1 = scmp.lt.s32.totalorder %s1750_s1, %s1445_s12 }
  0x4c   : > { %p1442_p9 = pnand %p1440_p8, %p1708_p4  ;;  %p1448_p11 = scmp.lt.s32.totalorder %s1446_s20, %s1439_s7 }
  0x4e   : > { %p1443_p12 = pneg %p1442_p9  ;;  %p1449_p6 = por %p1448_p11, %p1447_p1 }
  0x50   : > { %p1450_p13 = pnand %p1449_p6, %p1443_p12 }
  0x52   : > { %1453 = shalt.err (!%p1450_p13)
}
  0x53   : > { %s1999_s19 = smov 8   ;;  %s2000_s29 = smov 128  }
  0x54   : > { %1316 = dma.hbm_to_vmem [thread:$0]  (!%p1686_p0), %s1747_s10, 512, %s1750_s1, %s1760_s23, %s2000_s29, %s2000_s29, %s1999_s19  }
  0x55   : > { %s258_s14 = scalar_lea.vmem [#allocation8], %s1679_s6  ;;  %s1454_s26 = scalar_lea.hbm %s1756_s24, 512 }
  0x56   : > { %s266_s9 = sshll.u32 %s258_s14, 4  ;;  %p1455_p11 = scmp.ne.s32.totalorder %s1756_s24, %s1454_s26  ;;  %s1788_s9 = int_to_ptr.vmem [resolvable:$true] %s266_s9 }
  0x57   : > { %s1459_s11 = scalar_lea.hbm %s1969_s2, 1024  ;;  %p1460_p5 = scmp.lt.u32.totalorder %s1756_s24, %s1969_s2 }
  0x58   : > { %p1457_p2 = pnand %p1455_p11, %p1708_p4  ;;  %p1461_p7 = scmp.lt.u32.totalorder %s1459_s11, %s1454_s26 }
  0x59   : > { %p1463_p8 = scmp.lt.u32.totalorder %s1454_s26, %s1756_s24 }
  0x5a   : > { %p1458_p3 = pneg %p1457_p2  ;;  %p1462_p10 = por %p1461_p7, %p1460_p5 }
  0x5c   : > { %p1464_p9 = por %p1463_p8, %p1462_p10 }
  0x5e   : > { %p1465_p12 = pnand %p1464_p9, %p1458_p3 }
  0x60   : > { %1468 = shalt.err (!%p1465_p12)
}
  0x61   : > { %s1469_s1 = scalar_lea.vmem %s1788_s9, 512  ;;  %s1576_s23 = smov [#allocation8]  }
  0x62   : > { %p1470_p1 = scmp.ne.s32.totalorder %s1788_s9, %s1469_s1  ;;  %s1474_s6 = sshll.u32 %s1576_s23, 4  ;;  %s1475_s6 = int_to_ptr.vmem [resolvable:$false] %s1474_s6 }
  0x63   : > { %s1476_s10 = scalar_lea.vmem %s1475_s6, 1024  ;;  %p1477_p11 = scmp.lt.s32.totalorder %s1788_s9, %s1475_s6 }
  0x64   : > { %p1472_p6 = pnand %p1470_p1, %p1708_p4  ;;  %p1478_p2 = scmp.lt.s32.totalorder %s1476_s10, %s1469_s1 }
  0x66   : > { %p1473_p13 = pneg %p1472_p6  ;;  %p1479_p5 = por %p1478_p2, %p1477_p11 }
  0x68   : > { %p1480_p7 = pnand %p1479_p5, %p1473_p13 }
  0x6a   : > { %1483 = shalt.err (!%p1480_p7)
}
  0x6b   : > { %1322 = dma.hbm_to_vmem [thread:$0]  (!%p1686_p0), %s1756_s24, 512, %s1788_s9, %s1702_s22, %s2000_s29, %s2000_s29, %s1999_s19  }
  0x6c   : > { %p2001_p4 = scmp.ne.s32.totalorder %s1997_s13, 0 }
  0x6d   : > { %s1818_s25 = sand.u32 (!%p2001_p4), 1, %s1554_s16   ;;  %p2002_p3 = scmp.ne.s32.totalorder (!%p2001_p4), %s1988_s27, 0 }
  0x6e   : > { %278 = sbr.rel (%p2001_p4) target bundleno = 626 (0x272), region = 36  ;;  %s1821_s14 = sshll.u32 (!%p2001_p4), %s1818_s25, 5 }
  0x6f   : > { %s281_s8 = scalar_lea.sflag (!%p2001_p4), [#allocation4], %s1818_s25  ;;  %s1825_s26 = scalar_lea.vmem (!%p2001_p4), [#allocation3], %s1821_s14 }
  0x75   : > { %1537 = dma.done.wait (%p2002_p3), %s281_s8, 512  }
  0x76   : > { %1539 = vsyncadd (%p2002_p3), %s281_s8, 4294966784  ;;  %s289_s22 = sand.u32 1, %s1639_s21   ;;  %s293_s13 = scalar_lea.vmem [#allocation6], %s1821_s14 }
  0x77   : > { %s290_s24 = scalar_lea.sflag [#allocation7], %s289_s22 }
  0x78   : > { %1541 = dma.done.wait (%p2002_p3), %s290_s24, 1024  }
  0x79   : > { %1543 = vsyncadd (%p2002_p3), %s290_s24, 4294966272  ;;  %vm357_vm0 = vcmask 261120   ;;  %v1577_v0 = vmov 0.0   ;;  %vm1578_vm1 = vmmov 0   ;;  %v370_v1 = vld [vmem:[%s293_s13] sm:$0xff]  ;;  %v371_v2 = vld [vmem:[%s293_s13 + $0x8] sm:$0xff] }
  0x7a   : > { %1265 = vmatprep.subr.mxu0 %v1577_v0  ;;  %1270 = vmatprep.subr.mxu1 %v1577_v0  ;;  %358 = vst.msk [vmem:[#allocation2] sm:$0xff] %vm357_vm0, %v1577_v0  ;;  %359 = vst.msk [vmem:[#allocation2 + $0x8] sm:$0xff] %vm357_vm0, %v1577_v0  ;;  %v362_v3 = vld [vmem:[%s1825_s26] sm:$0xff]  ;;  %v363_v5 = vld [vmem:[%s1825_s26 + $0x8] sm:$0xff]  ;;  %s1876_s21 = scalar_lea.vmem [#allocation8], %s1821_s14  ;;  %v1579_v16 = vmov 0  }
  0x7b   : > { %360 = vst.msk [vmem:[#allocation2 + $0x10] sm:$0xff] %vm357_vm0, %v1577_v0  ;;  %361 = vst.msk [vmem:[#allocation2 + $0x18] sm:$0xff] %vm357_vm0, %v1577_v0  ;;  %1267 = vmatprep.mubr.msk.f32.mxu0 %vm1578_vm1, %v1577_v0  ;;  %1272 = vmatprep.mubr.msk.f32.mxu1 %vm1578_vm1, %v1577_v0  ;;  %v366_v4 = vmul.f32 0.17677669, %v362_v3  ;;  %v372_v6 = vld [vmem:[%s293_s13 + $0x10] sm:$0xff]  ;;  %v373_v8 = vld [vmem:[%s293_s13 + $0x18] sm:$0xff] }
  0x7c   : > { %1266 = vmatpush3.xpose.msk.msra.mxu0 %vm357_vm0, %v370_v1  ;;  %1271 = vmatpush3.xpose.msk.msra.mxu1 %vm357_vm0, %v371_v2  ;;  %v367_v7 = vmul.f32 0.17677669, %v363_v5  ;;  %v364_v9 = vld [vmem:[%s1825_s26 + $0x10] sm:$0xff]  ;;  %v365_v10 = vld [vmem:[%s1825_s26 + $0x18] sm:$0xff]  ;;  %v374_v13 = vld [vmem:[%s1876_s21] sm:$0xff]  ;;  %vm694_vm4 = vcmask 64512  }
  0x7d   : > { %1275 = vmatprep.subr.mxu0 %v1577_v0  ;;  %1280 = vmatprep.subr.mxu1 %v1577_v0  ;;  %v368_v11 = vmul.f32 0.17677669, %v364_v9  ;;  %v369_v12 = vmul.f32 0.17677669, %v365_v10  ;;  %v375_v14 = vld [vmem:[%s1876_s21 + $0x8] sm:$0xff]  ;;  %v376_v60 = vld [vmem:[%s1876_s21 + $0x10] sm:$0xff] }
  0x7e   : > { %v683_v15 = vld [vmem:[%s1970_s3] sm:$0x3]  ;;  %v377_v61 = vld [vmem:[%s1876_s21 + $0x18] sm:$0xff]  ;;  %s1248_s29 = sshll.u32 %s1562_s18, 9  ;;  %s343_s9 = scalar_lea.vmem [#allocation9], %s1821_s14 }
  0x7f   : > { %1268 = vmatmul.mubr.msk.f32.vlgmr.msra.gmra.mrb[0].mxu0 %vm357_vm0, %v366_v4  ;;  %1273 = vmatmul.mubr.msk.f32.vlgmr.msra.gmra.mrb[0].mxu1 %vm357_vm0, %v367_v7  ;;  %vm684_vm2 = vnez %v683_v15  ;;  %s1056_s5 = sshll.u32 %s343_s9, 4  ;;  %s1914_s12 = scalar_lea.hbm %s1971_s4, %s1248_s29  ;;  %s1916_s5 = int_to_ptr.vmem [resolvable:$true] %s1056_s5 }
  0x80   : > { %1276 = vmatpush3.xpose.msk.msra.mxu0 %vm357_vm0, %v372_v6  ;;  %1281 = vmatpush3.xpose.msk.msra.mxu1 %vm357_vm0, %v373_v8  ;;  %v685_v17 = vsel %vm684_vm2, 16843009, %v1579_v16  ;;  %s1042_s18 = scalar_lea.sflag [#allocation5], %s1818_s25  ;;  %s1484_s20 = scalar_lea.vmem %s1916_s5, 512 }
  0x81   : > { %1277 = vmatprep.mubr.msk.f32.mxu0 %vm1578_vm1, %v1577_v0  ;;  %1282 = vmatprep.mubr.msk.f32.mxu1 %vm1578_vm1, %v1577_v0  ;;  %v686_v18 = vunpack.c.0.s8 %v685_v17  ;;  %v726_v1 = vld [vmem:[#allocation2] sm:$0xff]  ;;  %v727_v2 = vld [vmem:[#allocation2 + $0x8] sm:$0xff]  ;;  %p1485_p0 = scmp.ne.s32.totalorder %s1916_s5, %s1484_s20  ;;  %p2003_p10 = scmp.ne.s32.totalorder %s1989_s28, 0 }
  0x82   : > { %1285 = vmatprep.subr.mxu0 %v1577_v0  ;;  %1290 = vmatprep.subr.mxu1 %v1577_v0  ;;  %v728_v9 = vld [vmem:[#allocation2 + $0x10] sm:$0xff]  ;;  %v729_v10 = vld [vmem:[#allocation2 + $0x18] sm:$0xff]  ;;  %s1580_s1 = smov [#allocation9]  }
  0x83   : > { %1278 = vmatmul.mubr.msk.f32.vlgmr.msra.gmra.mrb[2].mxu0 %vm357_vm0, %v368_v11  ;;  %1283 = vmatmul.mubr.msk.f32.vlgmr.msra.gmra.mrb[2].mxu1 %vm357_vm0, %v369_v12  ;;  %vm687_vm3 = vcmp.ne.s32.totalorder %v686_v18, 0  ;;  %p1486_p8 = pnand %p1485_p0, %p2003_p10  ;;  %s1488_s23 = sshll.u32 %s1580_s1, 4  ;;  %s1489_s23 = int_to_ptr.vmem [resolvable:$false] %s1488_s23 }
  0x84   : > { %1287 = vmatprep.mubr.msk.f32.mxu0 %vm1578_vm1, %v1577_v0  ;;  %1292 = vmatprep.mubr.msk.f32.mxu1 %vm1578_vm1, %v1577_v0  ;;  %s1490_s6 = scalar_lea.vmem %s1489_s23, 1024  ;;  %p1491_p12 = scmp.lt.s32.totalorder %s1916_s5, %s1489_s23 }
  0x85   : > { %1286 = vmatpush3.msra.mxu0 %v374_v13  ;;  %1291 = vmatpush3.msra.mxu1 %v375_v14  ;;  %p1487_p9 = pneg %p1486_p8  ;;  %p1492_p1 = scmp.lt.s32.totalorder %s1490_s6, %s1484_s20 }
  0x86   : > { %1295 = vmatprep.subr.mxu0 %v1577_v0  ;;  %1300 = vmatprep.subr.mxu1 %v1577_v0 }
  0x87   : > { %p1493_p6 = por %p1492_p1, %p1491_p12 }
  0x89   : > { %p1494_p13 = pnand %p1493_p6, %p1487_p9 }
 0x152   : > { %v451_v19 = vpop.f32.mrb[0].mxu0  ;;  %v527_v20 = vpop.f32.mrb[0].mxu1 }
 0x153   : > { %v690_v21 = vsel %vm687_vm3, -inf, %v451_v19  ;;  %v691_v22 = vsel %vm687_vm3, -inf, %v527_v20  ;;  %v1269_v23 = vpop.f32.mrb[1].mxu0  ;;  %v1274_v24 = vpop.f32.mrb[1].mxu1 }
 0x154   : > { %v695_v25 = vsel %vm694_vm4, %v690_v21, -inf  ;;  %v696_v26 = vsel %vm694_vm4, %v691_v22, -inf }
 0x155   : > { %v699_v27 = vmax.f32 %v695_v25, %v696_v26 }
 0x156   : > { %v603_v28 = vpop.f32.mrb[2].mxu0  ;;  %v679_v29 = vpop.f32.mrb[2].mxu1 }
 0x157   : > { %v692_v30 = vsel %vm687_vm3, -inf, %v603_v28  ;;  %v693_v31 = vsel %vm687_vm3, -inf, %v679_v29  ;;  %v1279_v32 = vpop.f32.mrb[3].mxu0  ;;  %v1284_v33 = vpop.f32.mrb[3].mxu1 }
 0x158   : > { %v697_v34 = vsel %vm694_vm4, %v692_v30, -inf  ;;  %v698_v35 = vsel %vm694_vm4, %v693_v31, -inf }
 0x159   : > { %v700_v36 = vmax.f32 %v697_v34, %v698_v35 }
 0x15b   : > { %v701_v37 = vmax.f32 %v699_v27, %v700_v36 }
 0x15d   : > { %v702_v38 = vsub.f32 %v690_v21, %v701_v37  ;;  %v703_v39 = vsub.f32 %v691_v22, %v701_v37  ;;  %v704_v40 = vsub.f32 %v692_v30, %v701_v37  ;;  %v705_v41 = vsub.f32 %v693_v31, %v701_v37 }
 0x15f   : > { %v706_v42 = vmul.f32 1.442695, %v702_v38  ;;  %v708_v43 = vmul.f32 1.442695, %v703_v39  ;;  %v710_v44 = vmul.f32 1.442695, %v704_v40 }
 0x160   : > { %v712_v45 = vmul.f32 1.442695, %v705_v41 }
 0x161   : > { %1384 = vpow2.f32 %v706_v42 }
 0x162   : > { %1386 = vpow2.f32 %v708_v43 }
 0x163   : > { %1388 = vpow2.f32 %v710_v44 }
 0x164   : > { %1390 = vpow2.f32 %v712_v45 }
 0x16b   : > { %v1385_v46 = vpop.eup %1384 }
 0x16c   : > { %v1387_v47 = vpop.eup %1386  ;;  %v714_v48 = vsel %vm694_vm4, %v1385_v46, 0.0 }
 0x16d   : > { %v1389_v49 = vpop.eup %1388  ;;  %v715_v50 = vsel %vm694_vm4, %v1387_v47, 0.0 }
 0x16e   : > { %v1391_v51 = vpop.eup %1390  ;;  %v716_v52 = vadd.f32 %v715_v50, %v714_v48  ;;  %v717_v53 = vsel %vm694_vm4, %v1389_v49, 0.0 }
 0x16f   : > { %v719_v55 = vsel %vm694_vm4, %v1391_v51, 0.0 }
 0x170   : > { %v718_v54 = vadd.f32 %v717_v53, %v716_v52 }
 0x172   : > { %v720_v56 = vadd.f32 %v719_v55, %v718_v54 }
 0x174   : > { %1392 = vrcp.f32 %v720_v56 }
 0x17e   : > { %v1393_v57 = vpop.eup %1392 }
 0x17f   : > { %v722_v58 = vmul.f32 %v1393_v57, %v1385_v46  ;;  %v723_v59 = vmul.f32 %v1393_v57, %v1387_v47  ;;  %v724_v62 = vmul.f32 %v1393_v57, %v1389_v49  ;;  %v725_v63 = vmul.f32 %v1393_v57, %v1391_v51 }
 0x181   : > { %1288 = vmatmul.mubr.msk.f32.vlgmr.msra.gmra.mrb[4].mxu0 %vm694_vm4, %v722_v58  ;;  %1293 = vmatmul.mubr.msk.f32.vlgmr.msra.gmra.mrb[4].mxu1 %vm694_vm4, %v723_v59 }
 0x182   : > { %1296 = vmatpush3.msra.mxu0 %v376_v60  ;;  %1301 = vmatpush3.msra.mxu1 %v377_v61 }
 0x183   : > { %1297 = vmatprep.mubr.msk.f32.mxu0 %vm1578_vm1, %v1577_v0  ;;  %1302 = vmatprep.mubr.msk.f32.mxu1 %vm1578_vm1, %v1577_v0 }
 0x185   : > { %1298 = vmatmul.mubr.msk.f32.vlgmr.msra.gmra.mrb[6].mxu0 %vm694_vm4, %v724_v62  ;;  %1303 = vmatmul.mubr.msk.f32.vlgmr.msra.gmra.mrb[6].mxu1 %vm694_vm4, %v725_v63 }
 0x254   : > { %v799_v3 = vpop.f32.mrb[4].mxu0  ;;  %v872_v4 = vpop.f32.mrb[4].mxu1 }
 0x255   : > { %v1022_v5 = vadd.f32 %v799_v3, %v726_v1  ;;  %v1023_v6 = vadd.f32 %v872_v4, %v727_v2  ;;  %v1289_v7 = vpop.f32.mrb[5].mxu0  ;;  %v1294_v8 = vpop.f32.mrb[5].mxu1 }
 0x257   : > { %1026 = vst.msk [vmem:[#allocation2] sm:$0xff] %vm357_vm0, %v1022_v5  ;;  %1027 = vst.msk [vmem:[#allocation2 + $0x8] sm:$0xff] %vm357_vm0, %v1023_v6 }
 0x258   : > { %v945_v0 = vpop.f32.mrb[6].mxu0  ;;  %v1018_v11 = vpop.f32.mrb[6].mxu1 }
 0x259   : > { %v1024_v12 = vadd.f32 %v945_v0, %v728_v9  ;;  %v1025_v13 = vadd.f32 %v1018_v11, %v729_v10  ;;  %v1299_v14 = vpop.f32.mrb[7].mxu0  ;;  %v1304_v15 = vpop.f32.mrb[7].mxu1 }
 0x25b   : > { %1028 = vst.msk [vmem:[#allocation2 + $0x10] sm:$0xff] %vm357_vm0, %v1024_v12  ;;  %1029 = vst.msk [vmem:[#allocation2 + $0x18] sm:$0xff] %vm357_vm0, %v1025_v13 }
 0x25e   : > { %v1033_v16 = vld [vmem:[#allocation2] sm:$0xff]  ;;  %v1034_v17 = vld [vmem:[#allocation2 + $0x8] sm:$0xff] }
 0x25f   : > { %1037 = vst.msk [vmem:[%s343_s9] sm:$0xff] %vm357_vm0, %v1033_v16  ;;  %1038 = vst.msk [vmem:[%s343_s9 + $0x8] sm:$0xff] %vm357_vm0, %v1034_v17 }
 0x262   : > { %v1035_v18 = vld [vmem:[#allocation2 + $0x10] sm:$0xff]  ;;  %v1036_v19 = vld [vmem:[#allocation2 + $0x18] sm:$0xff] }
 0x263   : > { %1039 = vst.msk [vmem:[%s343_s9 + $0x10] sm:$0xff] %vm357_vm0, %v1035_v18  ;;  %1040 = vst.msk [vmem:[%s343_s9 + $0x18] sm:$0xff] %vm357_vm0, %v1036_v19 }
 0x264   : > { %1497 = shalt.err (!%p1494_p13)
}
 0x265   : > { %s1498_s10 = scalar_lea.hbm %s1914_s12, 512  ;;  %s1502_s26 = scalar_lea.hbm %s1971_s4, 1024 }
 0x266   : > { %p1499_p11 = scmp.ne.s32.totalorder %s1914_s12, %s1498_s10  ;;  %p1503_p7 = scmp.lt.u32.totalorder %s1914_s12, %s1971_s4 }
 0x267   : > { %p1504_p4 = scmp.lt.u32.totalorder %s1502_s26, %s1498_s10  ;;  %p1506_p0 = scmp.lt.u32.totalorder %s1498_s10, %s1914_s12 }
 0x268   : > { %p1500_p2 = pnand %p1499_p11, %p2003_p10 }
 0x269   : > { %p1505_p3 = por %p1504_p4, %p1503_p7 }
 0x26a   : > { %p1501_p5 = pneg %p1500_p2 }
 0x26b   : > { %p1507_p8 = por %p1506_p0, %p1505_p3 }
 0x26d   : > { %p1508_p9 = pnand %p1507_p8, %p1501_p5 }
 0x26f   : > { %1511 = shalt.err (!%p1508_p9)
}
 0x270   : > { %s1581_s13 = smov 128   ;;  %s1582_s21 = smov 8  }
 0x271   : > { %1311 = dma.vmem_to_hbm [thread:$0]  (%p2003_p10), %s1916_s5, 512, %s1914_s12, %s1042_s18, %s1581_s13, %s1581_s13, %s1582_s21  }
 0x272 PF: > { %s2004_s27 = sld [smem:[#allocation14_spill]]  ;;  %s1071_s19 = sand.u32 1, %s1550_s15  }
 0x273   : > { %p2005_p12 = scmp.ne.s32.totalorder %s1991_s30, 0  ;;  %s1072_s29 = scalar_lea.sflag [#allocation5], %s1071_s19 }
 0x278   : > { %p2006_p1 = scmp.ge.s32.totalorder %s2004_s27, 2 }
 0x27a   : > { %p1324_p6 = pnand %p2006_p1, %p2005_p12 }
 0x27c   : > { %1545 = dma.done.wait (!%p1324_p6), %s1072_s29, 512  }
 0x27d   : > { %1547 = vsyncadd (!%p1324_p6), %s1072_s29, 4294966784  ;;  %s23_s20 = sadd.s32 1, %s2004_s27   ;;  %s2007_s9 = sld [smem:[#allocation16_spill]] }
 0x27e   : > { %p20_p13 = scmp.ge.s32.totalorder %s23_s20, 4   ;;  %s2008_s18 = sld [smem:[#allocation13_spill]] }
 0x27f   : > { %s2009_s19 = sld [smem:[#allocation15_spill]]  ;;  %s2010_s15 = smov %s1554_s16 }
 0x280   : > { %s2011_s16 = smov %s1558_s17  ;;  %22 = sbr.rel (!%p20_p13) target bundleno = 10 (0xa), region = 116 }
 0x283   : > { %s2012_s17 = smov %s2007_s9 }
 0x287   :  { %1077 = vsyncpa [#allocation4], 1 }
 0x288   :  { %1079 = vsyncpa [#allocation4 + $0x1], 1 }
 0x289   :  { %1080 = vsyncpa [#allocation7], 1 }
 0x28a   :  { %1082 = vsyncpa [#allocation7 + $0x1], 1 }
 0x28b   :  { %1083 = vsyncpa [#allocation5], 1 }
 0x28c   :  { %1085 = vsyncpa [#allocation5 + $0x1], 1 }

</bundles_post_ra>
